<compile_context>
chip_gen: v7x
topology: tpu7x:2x2x1
jax: 0.10.0
libtpu: 0.0.40
codegen_flags: <defaults>
</compile_context>

<pallas_src>
import jax
import jax.numpy as jnp
from jax.experimental import pallas as pl
from jax.experimental.pallas import tpu as pltpu


def _softmax_rows(scores):
    """Row softmax over the last axis of a (tB, S) f32 tile."""
    m = jnp.max(scores, axis=1, keepdims=True)
    p = jnp.exp(scores - m)
    denom = jnp.sum(p, axis=1, keepdims=True)
    inv = pl.reciprocal(denom, approx=True)        # EUP slot (otherwise idle)
    inv = inv * (2.0 - denom * inv)                # one Newton step: err ~1e-7
    return p * inv


def attn_dot_kernel(hid_ref, enc_ref, out_ref):
    hid = hid_ref[...]                              # (tB, H)
    enc = enc_ref[...]                              # (S, tB, H) -- native layout
    # score[s, b] = sum_h enc[s, b, h] * hid[b, h]; accumulate in f32.
    scores_sb = jnp.sum(enc * hid[None, :, :], axis=2, dtype=jnp.float32)  # (S, tB)
    scores = scores_sb.T                            # small in-kernel transpose
    out_ref[...] = _softmax_rows(scores)            # (tB, S)


def attn_general_kernel(hid_ref, enc_ref, w_ref, b_ref, out_ref):
    hid = hid_ref[...]                              # (tB, H)
    enc = enc_ref[...]                              # (S, tB, H) -- native layout
    W = w_ref[...]                                  # (H, H) PyTorch Linear (out, in)
    bias = b_ref[...]                               # (1, H)
    # PyTorch: energy = enc @ W.T + bias ; score = sum_h hid * energy.
    # Reassociated (identical math):
    #   score[b,s] = sum_j enc[s,b,j] * (hid @ W)[b,j] + sum_h hid[b,h]*bias[h]
    u = jnp.dot(hid, W, preferred_element_type=jnp.float32)          # (tB, H) MXU
    hb = jnp.sum(hid.astype(jnp.float32) * bias.astype(jnp.float32),
                 axis=1, keepdims=True)                              # (tB, 1)
    scores_sb = jnp.sum(enc * u[None, :, :], axis=2, dtype=jnp.float32)  # (S, tB)
    scores = scores_sb.T + hb                                        # (tB, S)
    out_ref[...] = _softmax_rows(scores)


def _pick_tile_b(B, S, H, itemsize):
    # Per-buffer VMEM budget for the dominant (S, tB, H) encoder tile.  Kept
    # conservative (double-buffering + f32 intermediates still fit the 48 MiB
    # scoped limit below, and well inside v7x's 64 MiB physical VMEM).
    budget = 4 * 1024 * 1024
    rows = budget // max(1, S * H * itemsize)
    if rows >= B or B <= 8:
        return B                                    # full batch in one block
    return max(8, (rows // 8) * 8)                  # sublane-aligned batch tile


def attn_forward(method, hidden, encoder_outputs, params=None, tile_b=None):
    """hidden: (1, B, H), encoder_outputs: (S, B, H). Returns (B, 1, S) f32."""
    S, B, H = encoder_outputs.shape
    itemsize = encoder_outputs.dtype.itemsize
    hid = hidden.reshape(B, H)                      # free (drop leading 1)

    if tile_b is None:
        tile_b = _pick_tile_b(B, S, H, itemsize)
    nb = pl.cdiv(B, tile_b)

    compiler_params = pltpu.CompilerParams(
        dimension_semantics=("parallel",),          # megacore-shard batch (v7x)
        vmem_limit_bytes=48 * 1024 * 1024,          # above scoped default, safe on v7x
    )

    # Advisory cost model (dominant traffic is the encoder tensor).
    flops = 2 * S * B * H + 5 * B * S
    bytes_accessed = S * B * H * itemsize + B * H * itemsize + B * S * 4
    if method == 'general':
        flops += 2 * B * H * H
        bytes_accessed += (H * H + H) * itemsize
    cost = pl.CostEstimate(flops=int(flops), transcendentals=int(B * S),
                           bytes_accessed=int(bytes_accessed))

    hid_spec = pl.BlockSpec((tile_b, H), lambda b: (b, 0))
    enc_spec = pl.BlockSpec((S, tile_b, H), lambda b: (0, b, 0))   # no HBM transpose
    out_spec = pl.BlockSpec((tile_b, S), lambda b: (b, 0))
    out_shape = jax.ShapeDtypeStruct((B, S), jnp.float32)

    if method == 'dot':
        probs = pl.pallas_call(
            attn_dot_kernel,
            grid=(nb,),
            in_specs=[hid_spec, enc_spec],
            out_specs=out_spec,
            out_shape=out_shape,
            compiler_params=compiler_params,
            cost_estimate=cost,
        )(hid, encoder_outputs)
    elif method == 'general':
        W = params['attn_w']                        # (H, H)
        b = params['attn_b'].reshape(1, H)          # (1, H)
        probs = pl.pallas_call(
            attn_general_kernel,
            grid=(nb,),
            in_specs=[hid_spec, enc_spec,
                      pl.BlockSpec((H, H), lambda i: (0, 0)),
                      pl.BlockSpec((1, H), lambda i: (0, 0))],
            out_specs=out_spec,
            out_shape=out_shape,
            compiler_params=compiler_params,
            cost_estimate=cost,
        )(hid, encoder_outputs, W, b)
    else:
        # TODO(synk): 'concat' in the reference applies nn.Linear(H, H) to a
        # 2H-wide concatenation, which is a shape error in PyTorch itself; it
        # cannot be reproduced faithfully.
        raise NotImplementedError(f"method {method!r} not supported")

    return probs[:, None, :]                        # (B, 1, S) glue


# ---- pure-JAX reference (mirrors the PyTorch code line by line) ----
def attn_reference(method, hidden, encoder_outputs, params=None):
    if method == 'dot':
        scores = jnp.sum(hidden * encoder_outputs, axis=2)           # (S, B)
    elif method == 'general':
        W, b = params['attn_w'], params['attn_b']
        energy = jnp.einsum('sbh,oh->sbo', encoder_outputs, W) + b   # Linear
        scores = jnp.sum(hidden * energy, axis=2)                    # (S, B)
    else:
        raise NotImplementedError(method)
    e = scores.T                                                     # (B, S)
    return jax.nn.softmax(e, axis=1)[:, None, :]                     # (B, 1, S)


if __name__ == "__main__":
    root = jax.random.PRNGKey(0)

    def run_case(B, S, H, tile_b=None, atol=2e-5, rtol=1e-4):
        k1, k2, k3, k4 = jax.random.split(jax.random.fold_in(root, B * 1000 + S), 4)
        hidden = jax.random.normal(k1, (1, B, H), dtype=jnp.float32)
        encoder_outputs = jax.random.normal(k2, (S, B, H), dtype=jnp.float32)
        params = {
            'attn_w': jax.random.normal(k3, (H, H), dtype=jnp.float32) * 0.1,
            'attn_b': jax.random.normal(k4, (H,), dtype=jnp.float32) * 0.1,
        }
        ok = True
        for method in ('dot', 'general'):
            out = attn_forward(method, hidden, encoder_outputs, params, tile_b=tile_b)
            out = jax.block_until_ready(out)
            ref = attn_reference(method, hidden, encoder_outputs, params)
            assert out.shape == (B, 1, S), out.shape
            if not jnp.allclose(out, ref, atol=atol, rtol=rtol):
                ok = False
                err = float(jnp.max(jnp.abs(out - ref)))
                print(f"MISMATCH B={B} S={S} H={H} method={method} max_err={err}")
        return ok

    ok = True
    # tiny shapes implied by the module interface (single block over B)
    ok &= run_case(B=2, S=8, H=32)
    # moderate, lane-dense shapes that exercise the batch grid (tile_b=8 -> grid=(2,))
    ok &= run_case(B=16, S=128, H=128, tile_b=8)

    if ok:
        print("KERNEL_OK")
</pallas_src>

<mosaic_0001>
module attributes {stable_mosaic.version = 11 : i64} {
  func.func @attn_dot_kernel(%arg0: i32, %arg1: memref<2x32xf32, #tpu.memory_space<vmem>>, %arg2: memref<8x2x32xf32, #tpu.memory_space<vmem>>, %arg3: memref<2x8xf32, #tpu.memory_space<vmem>>) attributes {dimension_semantics = [#tpu.dimension_semantics<parallel>], iteration_bounds = array<i64: 1>, scalar_prefetch = 0 : i64, scratch_operands = 0 : i64, tpu.core_type = #tpu.core_type<tc>, window_params = [{transform_indices = @transform_0, window_bounds = array<i64: 2, 32>}, {transform_indices = @transform_1, window_bounds = array<i64: 8, 2, 32>}, {transform_indices = @transform_2, window_bounds = array<i64: 2, 8>}]} {
    %c0 = arith.constant 0 : index
    %c0_0 = arith.constant 0 : index
    %0 = vector.load %arg1[%c0, %c0_0] : memref<2x32xf32, #tpu.memory_space<vmem>>, vector<2x32xf32>
    %c0_1 = arith.constant 0 : index
    %c0_2 = arith.constant 0 : index
    %c0_3 = arith.constant 0 : index
    %1 = vector.load %arg2[%c0_1, %c0_2, %c0_3] : memref<8x2x32xf32, #tpu.memory_space<vmem>>, vector<8x2x32xf32>
    %2 = vector.shape_cast %0 : vector<2x32xf32> to vector<1x2x32xf32>
    %3 = vector.broadcast %2 : vector<1x2x32xf32> to vector<8x2x32xf32>
    %4 = arith.mulf %1, %3 : vector<8x2x32xf32>
    %cst = arith.constant dense<0.000000e+00> : vector<8x2xf32>
    %5 = vector.multi_reduction <add>, %4, %cst [2] : vector<8x2x32xf32> to vector<8x2xf32>
    %6 = tpu.transpose %5, [1, 0] : vector<8x2xf32> -> vector<2x8xf32>
    %cst_4 = arith.constant dense<0xFF800000> : vector<2xf32>
    %7 = vector.multi_reduction <maximumf>, %6, %cst_4 [1] : vector<2x8xf32> to vector<2xf32>
    %8 = vector.shape_cast %7 : vector<2xf32> to vector<2x1xf32>
    %9 = vector.broadcast %8 : vector<2x1xf32> to vector<2x8xf32>
    %10 = arith.subf %6, %9 : vector<2x8xf32>
    %11 = math.exp %10 : vector<2x8xf32>
    %cst_5 = arith.constant dense<0.000000e+00> : vector<2xf32>
    %12 = vector.multi_reduction <add>, %11, %cst_5 [1] : vector<2x8xf32> to vector<2xf32>
    %13 = vector.shape_cast %12 : vector<2xf32> to vector<2x1xf32>
    %14 = tpu.reciprocal %13 {approx = true} : vector<2x1xf32> -> vector<2x1xf32>
    %15 = arith.mulf %13, %14 : vector<2x1xf32>
    %cst_6 = arith.constant 2.000000e+00 : f32
    %16 = vector.broadcast %cst_6 : f32 to vector<2x1xf32>
    %17 = arith.subf %16, %15 : vector<2x1xf32>
    %18 = arith.mulf %14, %17 : vector<2x1xf32>
    %19 = vector.broadcast %18 : vector<2x1xf32> to vector<2x8xf32>
    %20 = arith.mulf %11, %19 : vector<2x8xf32>
    %c0_7 = arith.constant 0 : index
    %c0_8 = arith.constant 0 : index
    %21 = vector.load %arg3[%c0_7, %c0_8] : memref<2x8xf32, #tpu.memory_space<vmem>>, vector<2x8xf32>
    tpu.vector_store %arg3[%c0_7, %c0_8], %20 {strides = array<i32>} : memref<2x8xf32, #tpu.memory_space<vmem>>, vector<2x8xf32>,
    return
  }
  func.func @transform_0(%arg0: i32) -> (i32, i32) {
    %c0_i32 = arith.constant 0 : i32
    %c0_i32_0 = arith.constant 0 : i32
    return %arg0, %c0_i32 : i32, i32
  }
  func.func @transform_1(%arg0: i32) -> (i32, i32, i32) {
    %c0_i32 = arith.constant 0 : i32
    %c0_i32_0 = arith.constant 0 : i32
    %c0_i32_1 = arith.constant 0 : i32
    return %c0_i32, %arg0, %c0_i32_0 : i32, i32, i32
  }
  func.func @transform_2(%arg0: i32) -> (i32, i32) {
    %c0_i32 = arith.constant 0 : i32
    %c0_i32_0 = arith.constant 0 : i32
    return %arg0, %c0_i32 : i32, i32
  }
}

</mosaic_0001>

<bundles_post_ra>
// kernel: tpu_custom_call.1
= control target key start
LH: loop header
LB: loop body
LE: loop exit
PB: predicated region body
PF: predicated region fallthrough
CT: control target
= control target key end

     0   :  { %7 = vsyncpa [#allocation3], 0  ;;  %s357_s0 = inlined_call_operand.hbm [shape: f32[2,32], index: 0, kind: input, shape index: {}]   ;;  %s358_s1 = inlined_call_operand.hbm [shape: f32[8,2,32], index: 1, kind: input, shape index: {}]   ;;  %s359_s2 = inlined_call_operand.hbm [shape: f32[2,8], index: 2, kind: output, shape index: {}]  }
   0x1   :  { %8 = vsyncpa [#allocation6], 0 }
   0x2   :  { %9 = vsyncpa [#allocation4], 0  ;;  %s283_s9 = smov [#allocation2]   ;;  %s284_s11 = smov [#allocation5]  }
   0x3   :  { %s16_s10 = sshll.u32 %s283_s9, 4  ;;  %s25_s12 = sshll.u32 %s284_s11, 4  ;;  %s17_s10 = int_to_ptr.vmem [resolvable:$true] %s16_s10  ;;  %s303_s12 = int_to_ptr.vmem [resolvable:$true] %s25_s12 }
   0x4   :  { %s211_s15 = scalar_lea.hbm %s357_s0, 32 }
   0x5   :  { %p212_p0 = scmp.ne.s32.totalorder %s357_s0, %s211_s15  ;;  %p215_p1 = scmp.lt.u32.totalorder %s211_s15, %s357_s0 }
   0x7   :  { %p217_p2 = pnand %p215_p1, %p212_p0 }
   0x9   :  { %220 = shalt.err (!%p217_p2)
}
   0xa   :  { %s221_s20 = scalar_lea.vmem %s17_s10, 32  ;;  %p226_p4 = scmp.lt.s32.totalorder %s17_s10, %s17_s10 }
   0xb   :  { %p222_p3 = scmp.ne.s32.totalorder %s17_s10, %s221_s20  ;;  %p227_p5 = scmp.lt.s32.totalorder %s221_s20, %s221_s20 }
   0xd   :  { %p228_p6 = por %p227_p5, %p226_p4 }
   0xf   :  { %p229_p7 = pnand %p228_p6, %p222_p3 }
  0x11   :  { %232 = shalt.err (!%p229_p7)
}
  0x12   :  { %19 = dma.hbm_to_vmem [thread:$0]  %s357_s0, 32, %s17_s10, [#allocation3]  }
  0x13   :  { %s233_s25 = scalar_lea.hbm %s358_s1, 256 }
  0x14   :  { %p234_p8 = scmp.ne.s32.totalorder %s358_s1, %s233_s25  ;;  %p237_p9 = scmp.lt.u32.totalorder %s233_s25, %s358_s1 }
  0x16   :  { %p239_p10 = pnand %p237_p9, %p234_p8 }
  0x18   :  { %242 = shalt.err (!%p239_p10)
}
  0x19   :  { %s243_s30 = scalar_lea.vmem %s303_s12, 256  ;;  %p248_p12 = scmp.lt.s32.totalorder %s303_s12, %s303_s12 }
  0x1a   :  { %p244_p11 = scmp.ne.s32.totalorder %s303_s12, %s243_s30  ;;  %p249_p13 = scmp.lt.s32.totalorder %s243_s30, %s243_s30 }
  0x1c   :  { %p250_p0 = por %p249_p13, %p248_p12 }
  0x1e   :  { %p251_p1 = pnand %p250_p0, %p244_p11 }
  0x20   :  { %254 = shalt.err (!%p251_p1)
}
  0x21   :  { %s285_s0 = smov 32   ;;  %s286_s3 = smov 2  }
  0x22   :  { %31 = dma.hbm_to_vmem [thread:$0]  %s358_s1, 256, %s303_s12, [#allocation6], %s285_s0, %s285_s0, %s286_s3  }
  0x23   :  { %277 = dma.done.wait [#allocation3], 32  }
  0x24   :  { %278 = vsyncadd [#allocation3], 4294967264 }
  0x25   :  { %279 = dma.done.wait [#allocation6], 256  }
  0x26   :  { %280 = vsyncadd [#allocation6], 4294967040  ;;  %vm55_vm0 = vcmask 254976   ;;  %v38_v0 = vld [vmem:[#allocation2] sm:$0x3]  ;;  %v88_v25 = vlaneseq  ;;  %vm122_vm1 = vcmask 1041409  }
  0x27   :  { %v39_v1 = vld [vmem:[#allocation5] sm:$0x3]  ;;  %v41_v2 = vld [vmem:[#allocation5 + $0x4] sm:$0x3]  ;;  %v40_v5 = vld [vmem:[#allocation5 + $0x2] sm:$0x3] }
  0x28   :  { %v47_v3 = vmul.f32 %v39_v1, %v38_v0  ;;  %v49_v4 = vmul.f32 %v41_v2, %v38_v0  ;;  %v42_v6 = vld [vmem:[#allocation5 + $0x6] sm:$0x3]  ;;  %v48_v7 = vmul.f32 %v40_v5, %v38_v0  ;;  %v43_v9 = vld [vmem:[#allocation5 + $0x8] sm:$0x3]  ;;  %v44_v10 = vld [vmem:[#allocation5 + $0xa] sm:$0x3] }
  0x29   :  { %v50_v8 = vmul.f32 %v42_v6, %v38_v0  ;;  %v51_v15 = vmul.f32 %v43_v9, %v38_v0  ;;  %v52_v16 = vmul.f32 %v44_v10, %v38_v0  ;;  %v45_v17 = vld [vmem:[#allocation5 + $0xc] sm:$0x3]  ;;  %v46_v18 = vld [vmem:[#allocation5 + $0xe] sm:$0x3]  ;;  %v89_v26 = vand.u32 127, %v88_v25  ;;  %s287_s1 = smov [#allocation7]  }
  0x2a   :  { %v56_v11 = vsel %vm55_vm0, %v47_v3, 0.0  ;;  %v62_v12 = vsel %vm55_vm0, %v49_v4, 0.0  ;;  %v59_v13 = vsel %vm55_vm0, %v48_v7, 0.0  ;;  %v53_v21 = vmul.f32 %v45_v17, %v38_v0  ;;  %s191_s6 = sshll.u32 %s287_s1, 4  ;;  %s192_s6 = int_to_ptr.vmem [resolvable:$true] %s191_s6 }
  0x2b   :  { %57 = vadd.xlane.f32.xlu0 %v56_v11  ;;  %63 = vadd.xlane.f32.xlu1 %v62_v12  ;;  %v65_v14 = vsel %vm55_vm0, %v50_v8, 0.0  ;;  %v68_v19 = vsel %vm55_vm0, %v51_v15, 0.0  ;;  %v71_v20 = vsel %vm55_vm0, %v52_v16, 0.0  ;;  %v54_v22 = vmul.f32 %v46_v18, %v38_v0  ;;  %s255_s7 = scalar_lea.vmem %s192_s6, 32  ;;  %p260_p3 = scmp.lt.s32.totalorder %s192_s6, %s192_s6 }
  0x2c   :  { %v74_v23 = vsel %vm55_vm0, %v53_v21, 0.0  ;;  %v91_v27 = vshrl.u32 %v88_v25, 7  ;;  %vm124_vm2 = vcmask 1042434   ;;  %vm126_vm3 = vcmask 1043459   ;;  %p256_p2 = scmp.ne.s32.totalorder %s192_s6, %s255_s7  ;;  %p261_p4 = scmp.lt.s32.totalorder %s255_s7, %s255_s7 }
  0x2d   :  { %v77_v24 = vsel %vm55_vm0, %v54_v22, 0.0  ;;  %vm128_vm4 = vcmask 1044484   ;;  %vm130_vm5 = vcmask 1045509   ;;  %vm132_vm6 = vcmask 1046534  }
  0x2e   :  { %v92_v30 = vsub.s32 %v89_v26, %v91_v27  ;;  %vm134_vm7 = vcmask 1047559   ;;  %vm169_vm8 = vcmask 58368   ;;  %p262_p5 = por %p261_p4, %p260_p3 }
  0x2f   :  { %60 = vadd.xlane.f32.xlu0 %v59_v13  ;;  %66 = vadd.xlane.f32.xlu1 %v65_v14 }
  0x30   :  { %p263_p6 = pnand %p262_p5, %p256_p2 }
  0x33   :  { %69 = vadd.xlane.f32.xlu0 %v68_v19  ;;  %72 = vadd.xlane.f32.xlu1 %v71_v20 }
  0x37   :  { %75 = vadd.xlane.f32.xlu0 %v74_v23  ;;  %78 = vadd.xlane.f32.xlu1 %v77_v24 }
  0xb8   :  { %v58_v28 = vpop.xlane.xlu0 %57  ;;  %v64_v29 = vpop.xlane.xlu1 %63 }
  0xb9   :  { %v93_v33 = vrot.slane %v58_v28, %v92_v30  ;;  %v101_v36 = vrot.slane %v64_v29, %v92_v30 }
  0xbc   :  { %v61_v31 = vpop.xlane.xlu0 %60  ;;  %v67_v32 = vpop.xlane.xlu1 %66 }
  0xbd   :  { %v97_v34 = vrot.slane %v61_v31, %v92_v30  ;;  %v105_v35 = vrot.slane %v67_v32, %v92_v30 }
  0xbf   :  { %v123_v37 = vsel %vm122_vm1, %v97_v34, %v93_v33 }
  0xc0   :  { %v125_v38 = vsel %vm124_vm2, %v101_v36, %v123_v37  ;;  %v70_v39 = vpop.xlane.xlu0 %69  ;;  %v73_v40 = vpop.xlane.xlu1 %72 }
  0xc1   :  { %v127_v41 = vsel %vm126_vm3, %v105_v35, %v125_v38  ;;  %v109_v42 = vrot.slane %v70_v39, %v92_v30  ;;  %v113_v43 = vrot.slane %v73_v40, %v92_v30 }
  0xc3   :  { %v129_v44 = vsel %vm128_vm4, %v109_v42, %v127_v41 }
  0xc4   :  { %v76_v45 = vpop.xlane.xlu0 %75  ;;  %v79_v46 = vpop.xlane.xlu1 %78  ;;  %v131_v49 = vsel %vm130_vm5, %v113_v43, %v129_v44 }
  0xc5   :  { %v117_v47 = vrot.slane %v76_v45, %v92_v30  ;;  %v121_v48 = vrot.slane %v79_v46, %v92_v30 }
  0xc7   :  { %v133_v50 = vsel %vm132_vm6, %v117_v47, %v131_v49 }
  0xc8   :  { %v135_v51 = vsel %vm134_vm7, %v121_v48, %v133_v50 }
  0xc9   :  { %137 = vxpose.xlu0.b32.start.end [1/1] (short) (narrow) %v135_v51, 8 }
 0x149   :  { %v153_v52 = vpop.trf.xlu0 }
 0x14a   :  { %v170_v53 = vsel %vm169_vm8, %v153_v52, -inf }
 0x14b   :  { %171 = vmax.xlane.f32.xlu1 %v170_v53 }
 0x1d8   :  { %v172_v54 = vpop.xlane.xlu1 %171 }
 0x1d9   :  { %v173_v55 = vsub.f32 %v153_v52, %v172_v54 }
 0x1db   :  { %v174_v56 = vmul.f32 1.442695, %v173_v55 }
 0x1dd   :  { %207 = vpow2.f32 %v174_v56 }
 0x1e7   :  { %v208_v57 = vpop.eup %207 }
 0x1e8   :  { %v176_v58 = vsel %vm169_vm8, %v208_v57, 0.0 }
 0x1e9   :  { %177 = vadd.xlane.f32.xlu1 %v176_v58 }
 0x276   :  { %v178_v59 = vpop.xlane.xlu1 %177 }
 0x277   :  { %209 = vrcp.f32 %v178_v59 }
 0x281   :  { %v210_v60 = vpop.eup %209 }
 0x282   :  { %v180_v61 = vmul.f32 %v210_v60, %v178_v59 }
 0x284   :  { %v181_v62 = vsub.f32 2.0, %v180_v61 }
 0x286   :  { %v182_v63 = vmul.f32 %v210_v60, %v181_v62 }
 0x288   :  { %v183_v0 = vmul.f32 %v208_v57, %v182_v63 }
 0x28a   :  { %184 = vst.msk [vmem:[#allocation7] sm:$0x3] %vm169_vm8, %v183_v0 }
 0x28b   :  { %266 = shalt.err (!%p263_p6)
}
 0x28c   :  { %s267_s10 = scalar_lea.hbm %s359_s2, 32 }
 0x28d   :  { %p268_p7 = scmp.ne.s32.totalorder %s359_s2, %s267_s10  ;;  %p271_p8 = scmp.lt.u32.totalorder %s267_s10, %s359_s2 }
 0x28f   :  { %p273_p9 = pnand %p271_p8, %p268_p7 }
 0x291   :  { %276 = shalt.err (!%p273_p9)
}
 0x292   :  { %194 = dma.vmem_to_hbm [thread:$0]  %s192_s6, 32, %s359_s2, [#allocation4]  }
 0x293   :  { %281 = dma.done.wait [#allocation4], 32  }
 0x294   :  { %282 = vsyncadd [#allocation4], 4294967264 }
 0x295   :  { %198 = vsyncpa [#allocation3], 1 }
 0x296   :  { %199 = vsyncpa [#allocation6], 1 }
 0x297   :  { %200 = vsyncpa [#allocation4], 1 }

</bundles_post_ra>
